<compile_context>
chip_gen: v6e
topology: v6e:2x2x1
jax: 0.10.0
libtpu: 0.0.40
codegen_flags: <defaults>
</compile_context>

<pallas_src>
import jax
import jax.numpy as jnp
from jax.experimental import pallas as pl
from jax.experimental.pallas import tpu as pltpu

LANE = 128
SUBLANE = 8
BIG_TILE = 2048          # large-batch row tile (review: sweep 1024-2048)
SMALL_B = 256            # below this, a single block (launch-latency bound)


def _round_up(n, m):
    return ((n + m - 1) // m) * m


# ----------------------------------------------------------------------------
# Kernel: out = relu(x @ W1 + b1) @ W2 + b2.
#   x   : (block_b, din)      W1 : (din, Hp)   b1 : (1, Hp)
#   h   : (block_b, Hp)       W2 : (Hp, Op)    b2 : (1, Op)
#   out : (block_b, Op)   with Op small (narrow store, low writeback traffic)
# ----------------------------------------------------------------------------
def a3c_fused_kernel(x_ref, w1_ref, b1_ref, w2_ref, b2_ref, out_ref):
    x = x_ref[...]
    h = jnp.dot(x, w1_ref[...], preferred_element_type=jnp.float32) + b1_ref[...]
    h = jnp.maximum(h, 0.0)
    out = jnp.dot(h, w2_ref[...], preferred_element_type=jnp.float32) + b2_ref[...]
    out_ref[...] = out.astype(out_ref.dtype)


# ----------------------------------------------------------------------------
# Parameter init (PyTorch nn.Linear default: U(-1/sqrt(fan_in), +1/sqrt(fan_in)))
# Weights stored as (in, out); biases as (1, out).
# ----------------------------------------------------------------------------
def init_params(key, num_inputs, num_outputs, hidden_size):
    ks = jax.random.split(key, 8)

    def lin(kw, kb, fan_in, fan_out):
        bound = 1.0 / jnp.sqrt(jnp.float32(fan_in))
        w = jax.random.uniform(kw, (fan_in, fan_out), jnp.float32, -bound, bound)
        b = jax.random.uniform(kb, (1, fan_out), jnp.float32, -bound, bound)
        return w, b

    wc1, bc1 = lin(ks[0], ks[1], num_inputs, hidden_size)
    wc2, bc2 = lin(ks[2], ks[3], hidden_size, 1)
    wa1, ba1 = lin(ks[4], ks[5], num_inputs, hidden_size)
    wa2, ba2 = lin(ks[6], ks[7], hidden_size, num_outputs)
    return dict(wc1=wc1, bc1=bc1, wc2=wc2, bc2=bc2,
                wa1=wa1, ba1=ba1, wa2=wa2, ba2=ba2)


# ----------------------------------------------------------------------------
# Pack actor+critic params into two fused matmuls (done once, outside kernel).
#   W1 = [wc1 | wa1 | 0]            : (din, Hp)   Hp = round_up(2*hidden, 128)
#   W2 = blockdiag(wc2, wa2) padded : (Hp, Op)    Op = round_up(1+A, 8)
#       value -> output col 0, probs -> cols 1..A
# Zero padding is exact: padded hidden cols get bias 0 -> relu(0)=0 -> no
# contribution through W2; padded output cols are sliced away in the wrapper.
# Kept in f32 for exact agreement with the reference.  (bf16 operands are a
# valid v6e/v7x option but change numerics vs. the 1e-5 asserts below.)
# ----------------------------------------------------------------------------
def pack_params(params, num_outputs):
    wc1, bc1 = params["wc1"], params["bc1"]
    wc2, bc2 = params["wc2"], params["bc2"]
    wa1, ba1 = params["wa1"], params["ba1"]
    wa2, ba2 = params["wa2"], params["ba2"]

    din, hidden = wc1.shape
    hp = _round_up(2 * hidden, LANE)            # lane-dense fused hidden width
    op = _round_up(1 + num_outputs, SUBLANE)    # narrow fused output width

    w1 = jnp.zeros((din, hp), jnp.float32)
    w1 = w1.at[:, :hidden].set(wc1).at[:, hidden:2 * hidden].set(wa1)
    b1 = jnp.zeros((1, hp), jnp.float32)
    b1 = b1.at[:, :hidden].set(bc1).at[:, hidden:2 * hidden].set(ba1)

    w2 = jnp.zeros((hp, op), jnp.float32)
    w2 = w2.at[:hidden, 0:1].set(wc2)
    w2 = w2.at[hidden:2 * hidden, 1:1 + num_outputs].set(wa2)
    b2 = jnp.zeros((1, op), jnp.float32)
    b2 = b2.at[:, 0:1].set(bc2).at[:, 1:1 + num_outputs].set(ba2)

    return dict(w1=w1, b1=b1, w2=w2, b2=b2, num_outputs=num_outputs)


def _pick_block_b(B):
    """Row-tile size: single block at tiny B (launch-bound); >=2 grid steps in
    the mid-B regime (so v7x's 2 TensorCores both get work); BIG_TILE rows at
    large B to amortize per-step pipeline overhead."""
    if B <= SMALL_B:
        return B                                   # one block, no padding
    if B <= 2 * BIG_TILE:
        return min(BIG_TILE, _round_up(pl.cdiv(B, 2), SUBLANE))
    return BIG_TILE


# ----------------------------------------------------------------------------
# Forward wrapper.
# ----------------------------------------------------------------------------
def a3c_forward(x, packed):
    """x: (B, num_inputs) f32. Returns (probs (B, num_outputs), value (B, 1))."""
    B, din = x.shape
    num_outputs = packed["num_outputs"]
    w1, b1, w2, b2 = packed["w1"], packed["b1"], packed["w2"], packed["b2"]
    hp = w1.shape[1]
    op = w2.shape[1]

    block_b = _pick_block_b(B)
    grid = (pl.cdiv(B, block_b),)   # no wrapper-side pad: Pallas masks the
                                    # partial last block on store.

    out = pl.pallas_call(
        a3c_fused_kernel,
        out_shape=jax.ShapeDtypeStruct((B, op), jnp.float32),
        grid=grid,
        in_specs=[
            pl.BlockSpec((block_b, din), lambda i: (i, 0)),   # x tile
            pl.BlockSpec((din, hp), lambda i: (0, 0)),        # W1 (resident)
            pl.BlockSpec((1, hp), lambda i: (0, 0)),          # b1 (resident)
            pl.BlockSpec((hp, op), lambda i: (0, 0)),         # W2 (resident)
            pl.BlockSpec((1, op), lambda i: (0, 0)),          # b2 (resident)
        ],
        out_specs=pl.BlockSpec((block_b, op), lambda i: (i, 0)),
        compiler_params=pltpu.CompilerParams(
            dimension_semantics=("parallel",)),
    )(x, w1, b1, w2, b2)

    value = out[:, 0:1]
    probs = out[:, 1:1 + num_outputs]
    return probs, value


# ----------------------------------------------------------------------------
# Plain-JAX reference of the PyTorch forward (unpacked params).
# ----------------------------------------------------------------------------
def a3c_reference(x, p):
    hc = jnp.maximum(x @ p["wc1"] + p["bc1"], 0.0)
    value = hc @ p["wc2"] + p["bc2"]
    ha = jnp.maximum(x @ p["wa1"] + p["ba1"], 0.0)
    probs = ha @ p["wa2"] + p["ba2"]
    return probs, value


if __name__ == "__main__":
    num_inputs, num_outputs, hidden_size = 16, 4, 32
    batch = 8

    key = jax.random.PRNGKey(0)
    k_params, k_x = jax.random.split(key)
    params = init_params(k_params, num_inputs, num_outputs, hidden_size)
    packed = pack_params(params, num_outputs)
    x = jax.random.normal(k_x, (batch, num_inputs), jnp.float32)

    probs, value = a3c_forward(x, packed)
    jax.block_until_ready((probs, value))

    probs_ref, value_ref = a3c_reference(x, params)
    assert probs.shape == (batch, num_outputs)
    assert value.shape == (batch, 1)
    assert jnp.allclose(probs, probs_ref, atol=1e-5, rtol=1e-5)
    assert jnp.allclose(value, value_ref, atol=1e-5, rtol=1e-5)

    # Extra check: a batch that exercises multi-step grid + ragged last block
    # (no wrapper pad), so the tiling path is validated too.
    big_b = 600
    xb = jax.random.normal(jax.random.PRNGKey(1), (big_b, num_inputs), jnp.float32)
    pb, vb = a3c_forward(xb, packed)
    jax.block_until_ready((pb, vb))
    pr, vr = a3c_reference(xb, params)
    assert jnp.allclose(pb, pr, atol=1e-5, rtol=1e-5)
    assert jnp.allclose(vb, vr, atol=1e-5, rtol=1e-5)

    # NOTE: like the PyTorch spec, `probs` is the raw actor output (no softmax).
    print("KERNEL_OK")
</pallas_src>

<mosaic_0001>
module attributes {stable_mosaic.version = 11 : i64} {
  func.func @a3c_fused_kernel(%arg0: i32, %arg1: memref<8x16xf32, #tpu.memory_space<vmem>>, %arg2: memref<16x128xf32, #tpu.memory_space<vmem>>, %arg3: memref<1x128xf32, #tpu.memory_space<vmem>>, %arg4: memref<128x8xf32, #tpu.memory_space<vmem>>, %arg5: memref<1x8xf32, #tpu.memory_space<vmem>>, %arg6: memref<8x8xf32, #tpu.memory_space<vmem>>) attributes {dimension_semantics = [#tpu.dimension_semantics<parallel>], iteration_bounds = array<i64: 1>, scalar_prefetch = 0 : i64, scratch_operands = 0 : i64, tpu.core_type = #tpu.core_type<tc>, window_params = [{transform_indices = @transform_0, window_bounds = array<i64: 8, 16>}, {pipeline_mode = #tpu.pipeline_mode<synchronous>, transform_indices = @transform_1, window_bounds = array<i64: 16, 128>}, {pipeline_mode = #tpu.pipeline_mode<synchronous>, transform_indices = @transform_2, window_bounds = array<i64: 1, 128>}, {pipeline_mode = #tpu.pipeline_mode<synchronous>, transform_indices = @transform_3, window_bounds = array<i64: 128, 8>}, {pipeline_mode = #tpu.pipeline_mode<synchronous>, transform_indices = @transform_4, window_bounds = array<i64: 1, 8>}, {transform_indices = @transform_5, window_bounds = array<i64: 8, 8>}]} {
    %c0 = arith.constant 0 : index
    %c0_0 = arith.constant 0 : index
    %0 = vector.load %arg1[%c0, %c0_0] : memref<8x16xf32, #tpu.memory_space<vmem>>, vector<8x16xf32>
    %c0_1 = arith.constant 0 : index
    %c0_2 = arith.constant 0 : index
    %1 = vector.load %arg2[%c0_1, %c0_2] : memref<16x128xf32, #tpu.memory_space<vmem>>, vector<16x128xf32>
    %cst = arith.constant dense<0.000000e+00> : vector<8x128xf32>
    %2 = tpu.matmul %0, %1, %cst {dimension_numbers = #tpu.dot_dimension_numbers<[1], [0], [0], [1], [0, 0, 1, 1], [], []>} : vector<8x16xf32>, vector<16x128xf32>, vector<8x128xf32> -> vector<8x128xf32>
    %c0_3 = arith.constant 0 : index
    %c0_4 = arith.constant 0 : index
    %3 = vector.load %arg3[%c0_3, %c0_4] : memref<1x128xf32, #tpu.memory_space<vmem>>, vector<1x128xf32>
    %4 = vector.broadcast %3 : vector<1x128xf32> to vector<8x128xf32>
    %5 = arith.addf %2, %4 : vector<8x128xf32>
    %cst_5 = arith.constant 0.000000e+00 : f32
    %6 = vector.broadcast %cst_5 : f32 to vector<8x128xf32>
    %7 = arith.maximumf %5, %6 : vector<8x128xf32>
    %c0_6 = arith.constant 0 : index
    %c0_7 = arith.constant 0 : index
    %8 = vector.load %arg4[%c0_6, %c0_7] : memref<128x8xf32, #tpu.memory_space<vmem>>, vector<128x8xf32>
    %cst_8 = arith.constant dense<0.000000e+00> : vector<8x8xf32>
    %9 = tpu.matmul %7, %8, %cst_8 {dimension_numbers = #tpu.dot_dimension_numbers<[1], [0], [0], [1], [0, 0, 1, 1], [], []>} : vector<8x128xf32>, vector<128x8xf32>, vector<8x8xf32> -> vector<8x8xf32>
    %c0_9 = arith.constant 0 : index
    %c0_10 = arith.constant 0 : index
    %10 = vector.load %arg5[%c0_9, %c0_10] : memref<1x8xf32, #tpu.memory_space<vmem>>, vector<1x8xf32>
    %11 = vector.broadcast %10 : vector<1x8xf32> to vector<8x8xf32>
    %12 = arith.addf %9, %11 : vector<8x8xf32>
    %c0_11 = arith.constant 0 : index
    %c0_12 = arith.constant 0 : index
    %13 = vector.load %arg6[%c0_11, %c0_12] : memref<8x8xf32, #tpu.memory_space<vmem>>, vector<8x8xf32>
    tpu.vector_store %arg6[%c0_11, %c0_12], %12 {strides = array<i32>} : memref<8x8xf32, #tpu.memory_space<vmem>>, vector<8x8xf32>,
    return
  }
  func.func @transform_0(%arg0: i32) -> (i32, i32) {
    %c0_i32 = arith.constant 0 : i32
    %c0_i32_0 = arith.constant 0 : i32
    return %arg0, %c0_i32 : i32, i32
  }
  func.func @transform_1(%arg0: i32) -> (i32, i32) {
    %c0_i32 = arith.constant 0 : i32
    %c0_i32_0 = arith.constant 0 : i32
    %c0_i32_1 = arith.constant 0 : i32
    return %c0_i32, %c0_i32_0 : i32, i32
  }
  func.func @transform_2(%arg0: i32) -> (i32, i32) {
    %c0_i32 = arith.constant 0 : i32
    %c0_i32_0 = arith.constant 0 : i32
    %c0_i32_1 = arith.constant 0 : i32
    return %c0_i32, %c0_i32_0 : i32, i32
  }
  func.func @transform_3(%arg0: i32) -> (i32, i32) {
    %c0_i32 = arith.constant 0 : i32
    %c0_i32_0 = arith.constant 0 : i32
    %c0_i32_1 = arith.constant 0 : i32
    return %c0_i32, %c0_i32_0 : i32, i32
  }
  func.func @transform_4(%arg0: i32) -> (i32, i32) {
    %c0_i32 = arith.constant 0 : i32
    %c0_i32_0 = arith.constant 0 : i32
    %c0_i32_1 = arith.constant 0 : i32
    return %c0_i32, %c0_i32_0 : i32, i32
  }
  func.func @transform_5(%arg0: i32) -> (i32, i32) {
    %c0_i32 = arith.constant 0 : i32
    %c0_i32_0 = arith.constant 0 : i32
    return %arg0, %c0_i32 : i32, i32
  }
}

</mosaic_0001>

<bundles_post_ra>
// kernel: tpu_custom_call.1
= control target key start
LH: loop header
LB: loop body
LE: loop exit
PB: predicated region body
PF: predicated region fallthrough
CT: control target
= control target key end

     0   :  { %v305_v1 = vmov 0.0   ;;  %vm306_vm0 = vmmov 0   ;;  %vm31_vm1 = vcmask 130048   ;;  %s406_s0 = inlined_call_operand.vmem [shape: f32[8,16], index: 0, kind: input, shape index: {}]   ;;  %s407_s1 = inlined_call_operand.vmem [shape: f32[16,128], index: 1, kind: input, shape index: {}]   ;;  %s408_s2 = inlined_call_operand.vmem [shape: f32[1,128], index: 2, kind: input, shape index: {}]   ;;  %s409_s3 = inlined_call_operand.vmem [shape: f32[128,8], index: 3, kind: input, shape index: {}]   ;;  %s410_s4 = inlined_call_operand.vmem [shape: f32[1,8], index: 4, kind: input, shape index: {}]   ;;  %s411_s5 = inlined_call_operand.hbm [shape: f32[8,8], index: 5, kind: output, shape index: {}]  }
   0x1   :  { %v23_v0 = vld [vmem:[%s407_s1 + $0x8] sm:$0xff]  ;;  %238 = vmatprep.subr.mxu0 %v305_v1  ;;  %v22_v2 = vld [vmem:[%s407_s1] sm:$0xff]  ;;  %242 = vmatprep.mubr.msk.f32.mxu0 %vm306_vm0, %v305_v1  ;;  %v121_v3 = vld [vmem:[%s409_s3 + $0x78] sm:$0xff] }
   0x2   :  { %239 = vmatpush3.msra.mxu0 %v23_v0  ;;  %v21_v4 = vld [vmem:[%s406_s0] sm:$0xff]  ;;  %245 = vmatprep.subr.mxu1 %v305_v1  ;;  %v120_v5 = vld [vmem:[%s409_s3 + $0x70] sm:$0xff]  ;;  %v119_v6 = vld [vmem:[%s409_s3 + $0x68] sm:$0xff] }
   0x3   :  { %240 = vmatprep.subr.mxu0 %v305_v1  ;;  %246 = vmatpush3.msra.mxu1 %v121_v3 }
   0x4   :  { %241 = vmatpush3.msra.mxu0 %v22_v2  ;;  %247 = vmatprep.subr.mxu1 %v305_v1 }
   0x5   :  { %243 = vmatmul.mubr.msk.f32.vlgmr.msra.gmra.mxu0 %vm31_vm1, %v21_v4  ;;  %248 = vmatpush3.msra.mxu1 %v120_v5 }
   0x6   :  { %10 = vsyncpa [#allocation3], 0  ;;  %249 = vmatprep.subr.mxu1 %v305_v1  ;;  %v118_v7 = vld [vmem:[%s409_s3 + $0x60] sm:$0xff]  ;;  %277 = vmatprep.mubr.msk.f32.mxu1 %vm306_vm0, %v305_v1  ;;  %v117_v8 = vld [vmem:[%s409_s3 + $0x58] sm:$0xff]  ;;  %s307_s6 = smov [#allocation2]   ;;  %vm199_vm2 = vcmask 64512  }
   0x7   :  { %250 = vmatpush3.msra.mxu1 %v119_v6  ;;  %v116_v9 = vld [vmem:[%s409_s3 + $0x50] sm:$0xff]  ;;  %v115_v10 = vld [vmem:[%s409_s3 + $0x48] sm:$0xff]  ;;  %v114_v11 = vld [vmem:[%s409_s3 + $0x40] sm:$0xff]  ;;  %s207_s7 = sshll.u32 %s307_s6, 4  ;;  %s208_s7 = int_to_ptr.vmem [resolvable:$true] %s207_s7 }
   0x8   :  { %251 = vmatprep.subr.mxu1 %v305_v1  ;;  %v113_v12 = vld [vmem:[%s409_s3 + $0x38] sm:$0xff]  ;;  %v112_v13 = vld [vmem:[%s409_s3 + $0x30] sm:$0xff]  ;;  %v111_v14 = vld [vmem:[%s409_s3 + $0x28] sm:$0xff]  ;;  %p288_p1 = scmp.lt.s32.totalorder %s208_s7, %s208_s7 }
   0x9   :  { %252 = vmatpush3.msra.mxu1 %v118_v7  ;;  %v110_v15 = vld [vmem:[%s409_s3 + $0x20] sm:$0xff]  ;;  %v109_v16 = vld [vmem:[%s409_s3 + $0x18] sm:$0xff]  ;;  %v108_v17 = vld [vmem:[%s409_s3 + $0x10] sm:$0xff] }
   0xa   :  { %253 = vmatprep.subr.mxu1 %v305_v1  ;;  %v107_v18 = vld [vmem:[%s409_s3 + $0x8] sm:$0xff]  ;;  %v106_v19 = vld [vmem:[%s409_s3] sm:$0xff]  ;;  %s283_s3 = scalar_lea.vmem %s208_s7, 128 }
   0xb   :  { %254 = vmatpush3.msra.mxu1 %v117_v8  ;;  %v215_v20 = vld [vmem:[%s408_s2] ss:$0 sm:$0xff]  ;;  %p284_p0 = scmp.ne.s32.totalorder %s208_s7, %s283_s3  ;;  %p289_p2 = scmp.lt.s32.totalorder %s283_s3, %s283_s3 }
   0xc   :  { %255 = vmatprep.subr.mxu1 %v305_v1  ;;  %v217_v25 = vld [vmem:[%s410_s4] ss:$0 sm:$0xff] }
   0xd   :  { %256 = vmatpush3.msra.mxu1 %v116_v9  ;;  %p290_p3 = por %p289_p2, %p288_p1 }
   0xe   :  { %257 = vmatprep.subr.mxu1 %v305_v1 }
   0xf   :  { %258 = vmatpush3.msra.mxu1 %v115_v10  ;;  %p291_p4 = pnand %p290_p3, %p284_p0 }
  0x10   :  { %259 = vmatprep.subr.mxu1 %v305_v1 }
  0x11   :  { %260 = vmatpush3.msra.mxu1 %v114_v11 }
  0x12   :  { %261 = vmatprep.subr.mxu1 %v305_v1 }
  0x13   :  { %262 = vmatpush3.msra.mxu1 %v113_v12 }
  0x14   :  { %263 = vmatprep.subr.mxu1 %v305_v1 }
  0x15   :  { %264 = vmatpush3.msra.mxu1 %v112_v13 }
  0x16   :  { %265 = vmatprep.subr.mxu1 %v305_v1 }
  0x17   :  { %266 = vmatpush3.msra.mxu1 %v111_v14 }
  0x18   :  { %267 = vmatprep.subr.mxu1 %v305_v1 }
  0x19   :  { %268 = vmatpush3.msra.mxu1 %v110_v15 }
  0x1a   :  { %269 = vmatprep.subr.mxu1 %v305_v1 }
  0x1b   :  { %270 = vmatpush3.msra.mxu1 %v109_v16 }
  0x1c   :  { %271 = vmatprep.subr.mxu1 %v305_v1 }
  0x1d   :  { %272 = vmatpush3.msra.mxu1 %v108_v17 }
  0x1e   :  { %273 = vmatprep.subr.mxu1 %v305_v1 }
  0x1f   :  { %274 = vmatpush3.msra.mxu1 %v107_v18 }
  0x20   :  { %275 = vmatprep.subr.mxu1 %v305_v1 }
  0x21   :  { %276 = vmatpush3.msra.mxu1 %v106_v19 }
  0xc5   :  { %v101_v21 = vpop.f32.mrf.mxu0 }
  0xc6   :  { %v102_v22 = vadd.f32 %v215_v20, %v101_v21 }
  0xc7   :  { %v244_v23 = vpop.f32.mrf.mxu0 }
  0xc8   :  { %v105_v24 = vmax.f32 %v102_v22, 0.0 }
  0xca   :  { %278 = vmatmul.mubr.f32.vlgmr.msra.gmra.mxu1 %v105_v24 }
 0x18a   :  { %v195_v26 = vpop.f32.mrf.mxu1 }
 0x18b   :  { %v196_v27 = vadd.f32 %v217_v25, %v195_v26 }
 0x18c   :  { %v279_v28 = vpop.f32.mrf.mxu1 }
 0x18d   :  { %200 = vst.msk [vmem:[#allocation2] sm:$0xff] %vm199_vm2, %v196_v27 }
 0x18e   :  { %294 = shalt.err (!%p291_p4)
}
 0x18f   :  { %210 = dma.vmem_to_hbm [thread:$0]  %s208_s7, 128, %s411_s5, [#allocation3]  }
 0x190   :  { %303 = dma.done.wait [#allocation3], 128  }
 0x191   :  { %304 = vsyncadd [#allocation3], 4294967168 }
 0x192   :  { %214 = vsyncpa [#allocation3], 1 }

</bundles_post_ra>
